<compile_context>
chip_gen: v7x
topology: tpu7x:2x2x1
jax: 0.10.0
libtpu: 0.0.40
codegen_flags: <defaults>
</compile_context>

<pallas_src>
import jax
import jax.numpy as jnp
from jax.experimental import pallas as pl
from jax.experimental.pallas import tpu as pltpu


_LANE = 128
_TARGET_BLOCK_BYTES = 4 * 1024 * 1024    # ~4 MiB per x block
_VMEM_LIMIT_BYTES = 32 * 1024 * 1024     # covers double-buffered in+out everywhere
_TINY_BYTES = 2 * 1024 * 1024            # below this, let XLA fuse the multiply


def _round_up(v, m):
    return ((v + m - 1) // m) * m


def _round_down(v, m):
    return (v // m) * m


def _sublane(itemsize):
    # Native sublane tile height per dtype width: 8 (f32), 16 (bf16/f16), 32 (i8/fp8).
    if itemsize >= 4:
        return 8
    return 8 * (4 // itemsize)


def _choose_tiles(batch, num_classes, itemsize):
    """Pick (rows, class_tile) so one x block is ~_TARGET_BLOCK_BYTES."""
    sub = _sublane(itemsize)
    row_bytes = num_classes * itemsize
    if sub * row_bytes <= _TARGET_BLOCK_BYTES:
        # Full class dim in one block (block dim == array dim: no 128-multiple
        # requirement; trailing <128-lane sliver just gets a masked store).
        tc = num_classes
        rows = max(sub, _round_down(_TARGET_BLOCK_BYTES // row_bytes, sub))
        if rows >= batch:
            rows = batch                      # full dim: any height is legal
    else:
        # Very wide classes: also tile the class dim (128-lane multiples) so a
        # minimum-height block stays within the VMEM budget on v7x.
        rows = sub if batch >= sub else batch
        tc = max(_LANE, _round_down(_TARGET_BLOCK_BYTES // (rows * itemsize), _LANE))
        if tc >= num_classes:
            tc = num_classes
    return rows, tc


def _lws_kernel(w_ref, x_ref, o_ref):
    # w_ref: (1, TC) weight tile, x_ref/o_ref: (TB, TC) tiles.
    # Pure VPU broadcast multiply; compute in f32 (matches PyTorch promotion
    # for f32 param * lower-precision activations), cast only the output.
    x = x_ref[...].astype(jnp.float32)
    w = w_ref[...].astype(jnp.float32)
    o_ref[...] = (x * w).astype(o_ref.dtype)


def learnable_weight_scaling(x, learned_norm, *, force_pallas=False,
                             tile_batch=None, tile_classes=None,
                             donate_x=False):
    """out = learned_norm * x, learned_norm shape (1, num_classes)."""
    batch, num_classes = x.shape
    assert learned_norm.shape == (1, num_classes)

    out_dtype = jnp.promote_types(x.dtype, learned_norm.dtype)
    itemsize = jnp.dtype(x.dtype).itemsize
    out_itemsize = jnp.dtype(out_dtype).itemsize
    total_bytes = batch * num_classes * (itemsize + out_itemsize)

    # Tiny-input fast path: a standalone pallas_call's launch/DMA-setup cost
    # dwarfs a few MiB of pure read+write work; plain jnp lets XLA fuse it.
    if not force_pallas and total_bytes < _TINY_BYTES:
        return (learned_norm * x).astype(out_dtype)

    sub = _sublane(itemsize)
    rows, tc = _choose_tiles(batch, num_classes, itemsize)
    if tile_batch is not None:
        rows = min(tile_batch, batch)
        if rows < batch:
            rows = min(batch, max(sub, _round_down(rows, sub)))
    if tile_classes is not None:
        tc = min(tile_classes, num_classes)
        if tc < num_classes:
            tc = min(num_classes, max(_LANE, _round_down(tc, _LANE)))

    grid = (pl.cdiv(batch, rows), pl.cdiv(num_classes, tc))

    # Accurate bandwidth-only cost so XLA can schedule around the custom call.
    cost = pl.CostEstimate(
        flops=batch * num_classes,
        transcendentals=0,
        bytes_accessed=batch * num_classes * (itemsize + out_itemsize)
        + num_classes * jnp.dtype(learned_norm.dtype).itemsize,
    )

    # Batch/class tiles are independent; on v7x shard the batch axis across
    # both TensorCores (no-op request elsewhere, guarded to be safe).
    batch_sem = pltpu.PARALLEL
    try:
        if "v7" in jax.devices()[0].device_kind.lower():
            batch_sem = pltpu.CORE_PARALLEL
    except Exception:  # pragma: no cover - device introspection is best-effort
        pass

    # Alias out onto x when the caller can donate it (same shape/dtype; HBM
    # traffic unchanged, but removes the output allocation).
    aliases = {1: 0} if (donate_x and out_dtype == x.dtype) else {}

    out = pl.pallas_call(
        _lws_kernel,
        out_shape=jax.ShapeDtypeStruct((batch, num_classes), out_dtype),
        grid_spec=pl.GridSpec(
            grid=grid,
            in_specs=[
                # Weight tile follows the class-tile index (negligible traffic).
                pl.BlockSpec((1, tc), lambda i, j: (0, j)),
                # Pipelined (rows, tc) x tiles.
                pl.BlockSpec((rows, tc), lambda i, j: (i, j)),
            ],
            out_specs=pl.BlockSpec((rows, tc), lambda i, j: (i, j)),
        ),
        compiler_params=pltpu.CompilerParams(
            dimension_semantics=(batch_sem, pltpu.ARBITRARY),
            vmem_limit_bytes=_VMEM_LIMIT_BYTES,
        ),
        cost_estimate=cost,
        input_output_aliases=aliases,
    )(learned_norm, x)
    return out


if __name__ == "__main__":
    key = jax.random.PRNGKey(0)
    k1, k2 = jax.random.split(key)

    # batch not a multiple of the tile, num_classes not a multiple of 128
    # -> exercises partial trailing blocks and full-dim (non-padded) class blocks.
    batch, num_classes = 20, 1000

    x = jax.random.normal(k1, (batch, num_classes), dtype=jnp.float32)
    # Module init is ones(1, C); perturb so the broadcast multiply is meaningful.
    learned_norm = 1.0 + 0.1 * jax.random.normal(k2, (1, num_classes), dtype=jnp.float32)

    ref = learned_norm * x

    # Forced Pallas path, small batch tile -> multiple grid steps with a
    # partial trailing batch block and full-dim class block (no pad/slice).
    out = learnable_weight_scaling(x, learned_norm, force_pallas=True, tile_batch=8)
    out = jax.block_until_ready(out)
    assert out.shape == (batch, num_classes)
    assert jnp.allclose(out, ref, atol=1e-6, rtol=1e-6), "mismatch (batch-tiled pallas)"

    # Forced class tiling -> 2-D grid with a masked trailing class block.
    out_c = learnable_weight_scaling(x, learned_norm, force_pallas=True,
                                     tile_batch=8, tile_classes=256)
    out_c = jax.block_until_ready(out_c)
    assert jnp.allclose(out_c, ref, atol=1e-6, rtol=1e-6), "mismatch (class-tiled pallas)"

    # x-aliased output variant.
    out_d = learnable_weight_scaling(x, learned_norm, force_pallas=True, donate_x=True)
    out_d = jax.block_until_ready(out_d)
    assert jnp.allclose(out_d, ref, atol=1e-6, rtol=1e-6), "mismatch (aliased pallas)"

    # Auto dispatch (tiny input -> fused jnp path).
    out2 = jax.block_until_ready(learnable_weight_scaling(x, learned_norm))
    assert jnp.allclose(out2, ref, atol=1e-6, rtol=1e-6), "mismatch (auto dispatch)"

    print("KERNEL_OK")
</pallas_src>

<mosaic_0001>
module attributes {stable_mosaic.version = 11 : i64} {
  func.func @_lws_kernel(%arg0: i32, %arg1: i32, %arg2: memref<1x1000xf32, #tpu.memory_space<vmem>>, %arg3: memref<8x1000xf32, #tpu.memory_space<vmem>>, %arg4: memref<8x1000xf32, #tpu.memory_space<vmem>>) attributes {dimension_semantics = [#tpu.dimension_semantics<parallel>, #tpu.dimension_semantics<arbitrary>], iteration_bounds = array<i64: 3, 1>, scalar_prefetch = 0 : i64, scratch_operands = 0 : i64, tpu.core_type = #tpu.core_type<tc>, window_params = [{transform_indices = @transform_0, window_bounds = array<i64: 1, 1000>}, {transform_indices = @transform_1, window_bounds = array<i64: 8, 1000>}, {transform_indices = @transform_2, window_bounds = array<i64: 8, 1000>}]} {
    %c0 = arith.constant 0 : index
    %c0_0 = arith.constant 0 : index
    %0 = vector.load %arg3[%c0, %c0_0] : memref<8x1000xf32, #tpu.memory_space<vmem>>, vector<8x1000xf32>
    %c0_1 = arith.constant 0 : index
    %c0_2 = arith.constant 0 : index
    %1 = vector.load %arg2[%c0_1, %c0_2] : memref<1x1000xf32, #tpu.memory_space<vmem>>, vector<1x1000xf32>
    %2 = vector.broadcast %1 : vector<1x1000xf32> to vector<8x1000xf32>
    %3 = arith.mulf %0, %2 : vector<8x1000xf32>
    %c0_3 = arith.constant 0 : index
    %c0_4 = arith.constant 0 : index
    %4 = vector.load %arg4[%c0_3, %c0_4] : memref<8x1000xf32, #tpu.memory_space<vmem>>, vector<8x1000xf32>
    tpu.vector_store %arg4[%c0_3, %c0_4], %3 {strides = array<i32>} : memref<8x1000xf32, #tpu.memory_space<vmem>>, vector<8x1000xf32>,
    return
  }
  func.func @transform_0(%arg0: i32, %arg1: i32) -> (i32, i32) {
    %c0_i32 = arith.constant 0 : i32
    %c0_i32_0 = arith.constant 0 : i32
    return %c0_i32, %arg1 : i32, i32
  }
  func.func @transform_1(%arg0: i32, %arg1: i32) -> (i32, i32) {
    %c0_i32 = arith.constant 0 : i32
    return %arg0, %arg1 : i32, i32
  }
  func.func @transform_2(%arg0: i32, %arg1: i32) -> (i32, i32) {
    %c0_i32 = arith.constant 0 : i32
    return %arg0, %arg1 : i32, i32
  }
}

</mosaic_0001>

<bundles_post_ra>
// kernel: tpu_custom_call.1
= control target key start
LH: loop header
LB: loop body
LE: loop exit
PB: predicated region body
PF: predicated region fallthrough
CT: control target
= control target key end

     0   :  { %7 = vsyncpa [#allocation3], 0  ;;  %s865_s0 = inlined_call_operand.hbm [shape: f32[1,1000], index: 0, kind: input, shape index: {}]   ;;  %s866_s1 = inlined_call_operand.hbm [shape: f32[20,1000], index: 1, kind: input, shape index: {}]   ;;  %s867_s2 = inlined_call_operand.hbm [shape: f32[20,1000], index: 2, kind: output, shape index: {}]  }
   0x1   :  { %8 = vsyncpa [#allocation6], 0 }
   0x2   :  { %10 = vsyncpa [#allocation6 + $0x1], 0 }
   0x3   :  { %11 = vsyncpa [#allocation4], 0 }
   0x4   :  { %13 = vsyncpa [#allocation4 + $0x1], 0  ;;  %s640_s9 = smov 0   ;;  %s642_s10 = smov 0  }
   0x5   :  { %s644_s11 = smov 0   ;;  %s646_s12 = smov 0  }
   0x6   :  { %s648_s13 = smov 0   ;;  %s650_s14 = smov 0  }
   0x7 LB: > { %s384_s15 = sadd.s32 4294967295, %s620_s14   ;;  %s385_s16 = sadd.s32 4294967294, %s620_s14   ;;  %s620_s14 = sphi %s650_s14, %s19_s14   ;;  %s616_s13 = sphi %s648_s13, %s891_s13   ;;  %s612_s12 = sphi %s646_s12, %s890_s12   ;;  %s608_s11 = sphi %s644_s11, %s889_s11   ;;  %s604_s10 = sphi %s642_s10, %s888_s10   ;;  %s600_s9 = sphi %s640_s9, %s887_s9  }
   0x8   : > { %p79_p0 = scmp.ne.s32.totalorder %s604_s10, %s600_s9  ;;  %p674_p1 = scmp.eq.s32.totalorder %s384_s15, 0 }
   0x9   : > { %p678_p2 = scmp.eq.s32.totalorder %s384_s15, 2  ;;  %p111_p3 = scmp.eq.s32.totalorder %s385_s16, 2 }
   0xa   : > { %s872_s17 = scalar_select %p674_p1, 1, 0 }
   0xb   : > { %s873_s18 = scalar_select %p678_p2, 1, 0 }
   0xc   : > { %p684_p4 = por %p674_p1, %p79_p0  ;;  %p386_p5 = scmp.ge.s32.totalorder %s620_s14, 1 }
   0xd   : > { %p689_p6 = por %p111_p3, %p79_p0  ;;  %p118_p7 = scmp.lt.s32.totalorder %s620_s14, 4 }
   0xe   : > { %s874_s19 = scalar_select %p684_p4, 1, 0 }
   0xf   : > { %s875_s20 = scalar_select %p689_p6, 1, 0 }
  0x10   : > { %p694_p8 = pnand %p386_p5, %p118_p7  ;;  %s622_s22 = smov [#allocation2]  }
  0x11   : > { %s134_s23 = sshll.u32 %s622_s22, 4  ;;  %s31_s25 = sadd.s32 1, %s616_s13  ;;  %s135_s23 = int_to_ptr.vmem [resolvable:$true] %s134_s23 }
  0x12   : > { %s876_s21 = scalar_select %p694_p8, 1, 0 }
  0x13   : > { %p411_p9 = pneg %p694_p8  ;;  %s66_s26 = sadd.s32 1, %s608_s11 }
  0x14   : > { %p708_p11 = scmp.ge.s32.totalorder %s31_s25, 3  ;;  %s476_s30 = scalar_lea.hbm %s865_s0, 128 }
  0x15   : > { %p702_p10 = pnand %p411_p9, %p674_p1  ;;  %p477_p12 = scmp.ne.s32.totalorder %s865_s0, %s476_s30 }
  0x16   : > { %s878_s27 = scalar_select %p708_p11, 1, 0 }
  0x17   : > { %p478_p13 = pneg %p702_p10  ;;  %p483_p5 = scmp.lt.u32.totalorder %s476_s30, %s865_s0 }
  0x19   : > { %p479_p0 = pnand %p478_p13, %p477_p12 }
  0x1b   : > { %p480_p3 = pneg %p479_p0 }
  0x1d   : > { %p485_p7 = pnand %p483_p5, %p480_p3 }
  0x1f   : > { %488 = shalt.err (!%p485_p7)
}
  0x20   : > { %s489_s7 = scalar_lea.vmem %s135_s23, 128  ;;  %p497_p1 = scmp.lt.s32.totalorder %s135_s23, %s135_s23 }
  0x21   : > { %p490_p9 = scmp.ne.s32.totalorder %s135_s23, %s489_s7  ;;  %p498_p8 = scmp.lt.s32.totalorder %s489_s7, %s489_s7 }
  0x23   : > { %p492_p6 = pnand %p490_p9, %p478_p13  ;;  %p499_p2 = por %p498_p8, %p497_p1 }
  0x25   : > { %p493_p4 = pneg %p492_p6 }
  0x27   : > { %p500_p11 = pnand %p499_p2, %p493_p4 }
  0x29   : > { %503 = shalt.err (!%p500_p11)
}
  0x2a   : > { %414 = dma.hbm_to_vmem [thread:$0]  (!%p702_p10), %s865_s0, 128, %s135_s23, [#allocation3]  }
  0x2b   : > { %p879_p1 = scmp.ne.s32.totalorder %s878_s27, 0  ;;  %p73_p2 = scmp.ne.s32.totalorder %s608_s11, %s604_s10 }
  0x2c   : > { %p74_p4 = scmp.eq.s32.totalorder %s620_s14, 0  ;;  %p424_p6 = scmp.lt.s32.totalorder %s620_s14, 3 }
  0x2d   : > { %s893_s25 = smov (%p879_p1, %s31_s25), 0  ;;  %p880_p12 = scmp.ne.s32.totalorder %s873_s18, 0 }
  0x2e   : > { %s61_s16 = ssub.s32 %s616_s13, %s893_s25  ;;  %p75_p11 = por %p74_p4, %p73_p2 }
  0x2f   : > { %p64_p8 = scmp.eq.s32.totalorder %s61_s16, 0  ;;  %p740_p13 = por %p880_p12, %p73_p2 }
  0x30   : > { %s145_s24 = sand.u32 1, %s608_s11   ;;  %s401_s27 = sshll.u32 %s616_s13, 10 }
  0x31   : > { %s748_s28 = scalar_select %p64_p8, %s608_s11, %s66_s26  }
  0x32   : > { %s389_s23 = sshll.u32 %s145_s24, 6  ;;  %s754_s3 = scalar_lea.hbm %s866_s1, %s401_s27 }
  0x33   : > { %s149_s18 = scalar_lea.vmem [#allocation5], %s389_s23  ;;  %p758_p10 = pnand %p424_p6, %p75_p11 }
  0x34   : > { %s159_s4 = sshll.u32 %s149_s18, 4  ;;  %s146_s26 = scalar_lea.sflag [#allocation6], %s145_s24  ;;  %s756_s4 = int_to_ptr.vmem [resolvable:$true] %s159_s4 }
  0x35   : > { %s504_s6 = scalar_lea.hbm %s754_s3, 1024  ;;  %p506_p3 = pneg %p758_p10 }
  0x36   : > { %p505_p0 = scmp.ne.s32.totalorder %s754_s3, %s504_s6  ;;  %s509_s15 = scalar_lea.hbm %s866_s1, 3072 }
  0x37   : > { %p510_p9 = scmp.lt.u32.totalorder %s754_s3, %s866_s1  ;;  %p511_p1 = scmp.lt.u32.totalorder %s509_s15, %s504_s6 }
  0x38   : > { %p507_p5 = pnand %p506_p3, %p505_p0  ;;  %p513_p4 = scmp.lt.u32.totalorder %s504_s6, %s754_s3 }
  0x39   : > { %p512_p2 = por %p511_p1, %p510_p9 }
  0x3a   : > { %p508_p7 = pneg %p507_p5 }
  0x3b   : > { %p514_p6 = por %p513_p4, %p512_p2 }
  0x3d   : > { %p515_p8 = pnand %p514_p6, %p508_p7 }
  0x3f   : > { %518 = shalt.err (!%p515_p8)
}
  0x40   : > { %s519_s24 = scalar_lea.vmem %s756_s4, 1024  ;;  %s623_s27 = smov [#allocation5]  }
  0x41   : > { %p520_p11 = scmp.ne.s32.totalorder %s756_s4, %s519_s24  ;;  %s524_s29 = sshll.u32 %s623_s27, 4  ;;  %s525_s29 = int_to_ptr.vmem [resolvable:$false] %s524_s29 }
  0x42   : > { %s526_s30 = scalar_lea.vmem %s525_s29, 2048  ;;  %p527_p5 = scmp.lt.s32.totalorder %s756_s4, %s525_s29 }
  0x43   : > { %p522_p12 = pnand %p520_p11, %p506_p3  ;;  %p528_p9 = scmp.lt.s32.totalorder %s526_s30, %s519_s24 }
  0x45   : > { %p523_p0 = pneg %p522_p12  ;;  %p529_p1 = por %p528_p9, %p527_p5 }
  0x47   : > { %p530_p2 = pnand %p529_p1, %p523_p0 }
  0x49   : > { %533 = shalt.err (!%p530_p2)
}
  0x4a   : > { %418 = dma.hbm_to_vmem [thread:$0]  (!%p758_p10), %s754_s3, 1024, %s756_s4, %s146_s26  }
  0x4b   : > { %p883_p7 = scmp.ne.s32.totalorder %s876_s21, 0 }
  0x4c   : > { %p884_p3 = scmp.ne.s32.totalorder (!%p883_p7), %s872_s17, 0 }
  0x4d   : > { %168 = sbr.rel (%p883_p7) target bundleno = 116 (0x74), region = 28 }
  0x54   : > { %587 = dma.done.wait (%p884_p3), [#allocation3], 128  }
  0x55   : > { %589 = vsyncadd (%p884_p3), [#allocation3], 4294967168  ;;  %s794_s18 = sand.u32 1, %s604_s10   ;;  %p885_p10 = scmp.ne.s32.totalorder %s874_s19, 0 }
  0x56   : > { %s394_s6 = sshll.u32 %s794_s18, 6  ;;  %s175_s5 = scalar_lea.sflag [#allocation6], %s794_s18 }
  0x57   : > { %s798_s7 = scalar_lea.vmem [#allocation5], %s394_s6 }
  0x58   : > { %591 = dma.done.wait (%p885_p10), %s175_s5, 1024  }
  0x59   : > { %593 = vsyncadd (%p885_p10), %s175_s5, 4294966272  ;;  %v212_v0 = vlaneseq  ;;  %v202_v10 = vld [vmem:[%s798_s7] sm:$0xff]  ;;  %v210_v11 = vld [vmem:[#allocation2] sm:$0xff]  ;;  %vm267_vm0 = vcmask 850944   ;;  %s402_s17 = sshll.u32 %s612_s12, 10  ;;  %s198_s19 = scalar_lea.vmem [#allocation7], %s394_s6 }
  0x5a   : > { %v203_v12 = vld [vmem:[%s798_s7 + $0x8] sm:$0xff]  ;;  %v204_v15 = vld [vmem:[%s798_s7 + $0x10] sm:$0xff]  ;;  %v205_v17 = vld [vmem:[%s798_s7 + $0x18] sm:$0xff]  ;;  %s286_s21 = sshll.u32 %s198_s19, 4  ;;  %s816_s4 = scalar_lea.hbm %s867_s2, %s402_s17  ;;  %s818_s21 = int_to_ptr.vmem [resolvable:$true] %s286_s21 }
  0x5b   : > { %v213_v1 = vshrl.u32 %v212_v0, 7  ;;  %v206_v19 = vld [vmem:[%s798_s7 + $0x20] sm:$0xff]  ;;  %v207_v21 = vld [vmem:[%s798_s7 + $0x28] sm:$0xff]  ;;  %v208_v23 = vld [vmem:[%s798_s7 + $0x30] sm:$0xff]  ;;  %s270_s26 = scalar_lea.sflag [#allocation4], %s794_s18  ;;  %s534_s8 = scalar_lea.vmem %s818_s21, 1024 }
  0x5c   : > { %v209_v25 = vld [vmem:[%s798_s7 + $0x38] sm:$0xff]  ;;  %p535_p4 = scmp.ne.s32.totalorder %s818_s21, %s534_s8  ;;  %s624_s15 = smov [#allocation7]  }
  0x5d   : > { %v214_v2 = vsub.s32 0, %v213_v1  ;;  %v218_v3 = vsub.s32 1, %v213_v1  ;;  %v222_v4 = vsub.s32 2, %v213_v1  ;;  %v226_v5 = vsub.s32 3, %v213_v1  ;;  %s538_s16 = sshll.u32 %s624_s15, 4  ;;  %s539_s16 = int_to_ptr.vmem [resolvable:$false] %s538_s16 }
  0x5e   : > { %v230_v6 = vsub.s32 4, %v213_v1  ;;  %v234_v7 = vsub.s32 5, %v213_v1  ;;  %v238_v8 = vsub.s32 6, %v213_v1  ;;  %v242_v9 = vsub.s32 7, %v213_v1  ;;  %p536_p6 = pnand %p535_p4, %p740_p13  ;;  %s540_s23 = scalar_lea.vmem %s539_s16, 2048 }
  0x5f   : > { %v215_v13 = vrot.slane %v210_v11, %v214_v2  ;;  %v219_v14 = vrot.slane %v210_v11, %v218_v3  ;;  %v223_v16 = vrot.slane %v210_v11, %v222_v4  ;;  %v227_v18 = vrot.slane %v210_v11, %v226_v5  ;;  %p541_p11 = scmp.lt.s32.totalorder %s818_s21, %s539_s16  ;;  %p542_p12 = scmp.lt.s32.totalorder %s540_s23, %s534_s8 }
  0x60   : > { %v231_v20 = vrot.slane %v210_v11, %v230_v6  ;;  %v235_v22 = vrot.slane %v210_v11, %v234_v7  ;;  %v239_v24 = vrot.slane %v210_v11, %v238_v8  ;;  %v243_v26 = vrot.slane %v210_v11, %v242_v9  ;;  %p537_p8 = pneg %p536_p6 }
  0x61   : > { %v252_v27 = vmul.f32 %v215_v13, %v202_v10  ;;  %v253_v28 = vmul.f32 %v219_v14, %v203_v12  ;;  %v254_v29 = vmul.f32 %v223_v16, %v204_v15  ;;  %v255_v30 = vmul.f32 %v227_v18, %v205_v17  ;;  %p543_p0 = por %p542_p12, %p541_p11 }
  0x62   : > { %v256_v31 = vmul.f32 %v231_v20, %v206_v19  ;;  %v257_v32 = vmul.f32 %v235_v22, %v207_v21  ;;  %v258_v33 = vmul.f32 %v239_v24, %v208_v23  ;;  %v259_v34 = vmul.f32 %v243_v26, %v209_v25 }
  0x63   : > { %260 = vst [vmem:[%s198_s19] sm:$0xff] %v252_v27  ;;  %261 = vst [vmem:[%s198_s19 + $0x8] sm:$0xff] %v253_v28  ;;  %p544_p5 = pnand %p543_p0, %p537_p8 }
  0x64   : > { %262 = vst [vmem:[%s198_s19 + $0x10] sm:$0xff] %v254_v29  ;;  %263 = vst [vmem:[%s198_s19 + $0x18] sm:$0xff] %v255_v30 }
  0x65   : > { %264 = vst [vmem:[%s198_s19 + $0x20] sm:$0xff] %v256_v31  ;;  %265 = vst [vmem:[%s198_s19 + $0x28] sm:$0xff] %v257_v32 }
  0x66   : > { %266 = vst [vmem:[%s198_s19 + $0x30] sm:$0xff] %v258_v33  ;;  %268 = vst.msk [vmem:[%s198_s19 + $0x38] sm:$0xff] %vm267_vm0, %v259_v34 }
  0x67   : > { %547 = shalt.err (!%p544_p5)
}
  0x68   : > { %s548_s24 = scalar_lea.hbm %s816_s4, 1024  ;;  %s552_s30 = scalar_lea.hbm %s867_s2, 3072 }
  0x69   : > { %p549_p9 = scmp.ne.s32.totalorder %s816_s4, %s548_s24  ;;  %p553_p7 = scmp.lt.u32.totalorder %s816_s4, %s867_s2 }
  0x6a   : > { %p554_p3 = scmp.lt.u32.totalorder %s552_s30, %s548_s24  ;;  %p556_p4 = scmp.lt.u32.totalorder %s548_s24, %s816_s4 }
  0x6b   : > { %p550_p1 = pnand %p549_p9, %p740_p13 }
  0x6c   : > { %p555_p10 = por %p554_p3, %p553_p7 }
  0x6d   : > { %p551_p2 = pneg %p550_p1 }
  0x6e   : > { %p557_p6 = por %p556_p4, %p555_p10 }
  0x70   : > { %p558_p8 = pnand %p557_p6, %p551_p2 }
  0x72   : > { %561 = shalt.err (!%p558_p8)
}
  0x73   : > { %409 = dma.vmem_to_hbm [thread:$0]  (%p740_p13), %s818_s21, 1024, %s816_s4, %s270_s26  }
  0x74 PF: > { %p426_p11 = scmp.ge.s32.totalorder %s620_s14, 2  ;;  %s298_s5 = sand.u32 1, %s600_s9  }
  0x75   : > { %p886_p12 = scmp.ne.s32.totalorder %s875_s20, 0  ;;  %s299_s7 = scalar_lea.sflag [#allocation4], %s298_s5 }
  0x77   : > { %p420_p0 = pnand %p426_p11, %p886_p12 }
  0x79   : > { %595 = dma.done.wait (!%p420_p0), %s299_s7, 1024  }
  0x7a   : > { %597 = vsyncadd (!%p420_p0), %s299_s7, 4294966272  ;;  %s19_s14 = sadd.s32 1, %s620_s14   ;;  %s887_s9 = smov %s604_s10 }
  0x7b   : > { %p16_p5 = scmp.ge.s32.totalorder %s19_s14, 5   ;;  %s888_s10 = smov %s608_s11 }
  0x7c   : > { %s889_s11 = smov %s748_s28  ;;  %s890_s12 = smov %s616_s13 }
  0x7d   : > { %s891_s13 = smov %s893_s25  ;;  %18 = sbr.rel (!%p16_p5) target bundleno = 7 (0x7), region = 79 }
  0x84   :  { %304 = vsyncpa [#allocation3], 1 }
  0x85   :  { %306 = vsyncpa [#allocation3 + $0x1], 1 }
  0x86   :  { %307 = vsyncpa [#allocation6], 1 }
  0x87   :  { %309 = vsyncpa [#allocation6 + $0x1], 1 }
  0x88   :  { %310 = vsyncpa [#allocation4], 1 }
  0x89   :  { %312 = vsyncpa [#allocation4 + $0x1], 1 }

</bundles_post_ra>
